<compile_context>
chip_gen: v6e
topology: v6e:2x2x1
jax: 0.10.0
libtpu: 0.0.40
codegen_flags: <defaults>
</compile_context>

<pallas_src>
import jax
import jax.numpy as jnp
from jax.experimental import pallas as pl
from jax.experimental.pallas import tpu as pltpu


def _hybrid_kernel(x_ref, out_ref):
    # x_ref:   (B, T) whole-array VMEM block (any float dtype).
    # out_ref: (1, T) f32 whole-array VMEM block.
    # Select row 0 (matches `input[0]` in the reference) with a static slice on the
    # ref view and cast to f32 in-kernel (hidden under the input DMA).
    theta = x_ref[0:1, :].astype(jnp.float32)
    # Expectation of the measured bit for  H -> RY(theta) -> measure :
    #   |amp1|^2 = (sin(theta/2) + cos(theta/2))^2 / 2 = (1 + sin(theta)) / 2
    out_ref[...] = 0.5 * (1.0 + jnp.sin(theta))


def hybrid_forward(x):
    """Forward pass of Hybrid.

    x: (batch, n_thetas) float array (f32 or bf16). Only row 0 is consumed
    (matches `input[0].tolist()` in the reference; batch > 1 rows are
    intentionally ignored). Returns a (1, n_thetas) float32 array of
    measurement expectations.
    """
    assert x.ndim == 2, "expected (batch, n_thetas) input"
    batch, t = x.shape

    # Near-zero cost hint so XLA's scheduler treats this call as cheap.
    cost = pl.CostEstimate(
        flops=3 * t,                # mul + add + (sin arithmetic folded into transc.)
        transcendentals=t,          # one sin per theta
        bytes_accessed=batch * t * jnp.dtype(x.dtype).itemsize + t * 4,
    )

    return pl.pallas_call(
        _hybrid_kernel,
        out_shape=jax.ShapeDtypeStruct((1, t), jnp.float32),
        in_specs=[pl.BlockSpec(memory_space=pltpu.VMEM)],
        out_specs=pl.BlockSpec(memory_space=pltpu.VMEM),
        cost_estimate=cost,
    )(x)


if __name__ == "__main__":
    key = jax.random.PRNGKey(0)
    # Small shape consistent with the module: a (batch=2, n_thetas=1) input,
    # as produced by the Linear(.., 1) layer feeding Hybrid in the original net.
    x = jax.random.normal(key, (2, 1), dtype=jnp.float32)

    out = hybrid_forward(x)
    out = jax.block_until_ready(out)

    # Pure-JAX reference check of the analytic expectation.
    ref = 0.5 * (1.0 + jnp.sin(x[0:1, :]))
    assert out.shape == (1, 1), out.shape
    assert jnp.allclose(out, ref, atol=1e-6), (out, ref)

    print("KERNEL_OK")
</pallas_src>

<mosaic_0001>
module attributes {stable_mosaic.version = 11 : i64} {
  func.func @_hybrid_kernel(%arg0: memref<2x1xf32, #tpu.memory_space<vmem>>, %arg1: memref<1x1xf32, #tpu.memory_space<vmem>>) attributes {dimension_semantics = [], scalar_prefetch = 0 : i64, scratch_operands = 0 : i64, tpu.core_type = #tpu.core_type<tc>} {
    %c0 = arith.constant 0 : index
    %c0_0 = arith.constant 0 : index
    %0 = vector.load %arg0[%c0, %c0_0] : memref<2x1xf32, #tpu.memory_space<vmem>>, vector<1x1xf32>
    %1 = math.sin %0 : vector<1x1xf32>
    %cst = arith.constant 1.000000e+00 : f32
    %2 = vector.broadcast %cst : f32 to vector<1x1xf32>
    %3 = arith.addf %2, %1 : vector<1x1xf32>
    %cst_1 = arith.constant 5.000000e-01 : f32
    %4 = vector.broadcast %cst_1 : f32 to vector<1x1xf32>
    %5 = arith.mulf %4, %3 : vector<1x1xf32>
    %c0_2 = arith.constant 0 : index
    %c0_3 = arith.constant 0 : index
    %6 = vector.load %arg1[%c0_2, %c0_3] : memref<1x1xf32, #tpu.memory_space<vmem>>, vector<1x1xf32>
    tpu.vector_store %arg1[%c0_2, %c0_3], %5 {strides = array<i32>} : memref<1x1xf32, #tpu.memory_space<vmem>>, vector<1x1xf32>,
    return
  }
}

</mosaic_0001>

<bundles_post_ra>
// kernel: tpu_custom_call.1
= control target key start
LH: loop header
LB: loop body
LE: loop exit
PB: predicated region body
PF: predicated region fallthrough
CT: control target
= control target key end

     0   :  { %s217_s0 = inlined_call_operand.vmem [shape: f32[2,1], index: 0, kind: input, shape index: {}]   ;;  %s218_s1 = inlined_call_operand.hbm [shape: f32[1,1], index: 1, kind: output, shape index: {}]  }
   0x1   :  { %v193_v0 = vld [vmem:[%s217_s0] sm:$0x1] }
   0x2   :  { %v13_v1 = vand.u32 2139095040, %v193_v0  ;;  %v10_v3 = vand.u32 2147483647, %v193_v0 }
   0x4   :  { %v14_v2 = vshrl.u32 %v13_v1, 23 }
   0x5   :  { %6 = vsyncpa [#allocation3], 0  ;;  %v17_v6 = vand.u32 8388607, %v10_v3  ;;  %v173_v12 = vmov 683565275   ;;  %vm102_vm12 = vweird.f32 %v193_v0 }
   0x6   :  { %v132_v4 = vadd.s32 4294967169, %v14_v2  ;;  %v174_v14 = vmov 2475754826   ;;  %v175_v16 = vmov 2131351028   ;;  %vm12_vm7 = vcmp.lt.s32.totalorder %v193_v0, 0 }
   0x7   :  { %v18_v9 = vor.u32 8388608, %v17_v6  ;;  %v176_v18 = vmov 2102212464   ;;  %v177_v20 = vmov 920167782   ;;  %s179_s0 = smov [#allocation2]  }
   0x8   :  { %v20_v5 = vadd.s32 1, %v132_v4  ;;  %v178_v27 = vmov 1326507024   ;;  %vm11_vm8 = vcmp.le.f32.partialorder %v10_v3, 0.7853982  ;;  %s124_s8 = sshll.u32 %s179_s0, 4  ;;  %s125_s8 = int_to_ptr.vmem [resolvable:$true] %s124_s8 }
   0x9   :  { %v58_v29 = vshll.u32 %v18_v9, 8  ;;  %vm116_vm13 = vcmask 0   ;;  %s151_s9 = scalar_lea.vmem %s125_s8, 16  ;;  %s155_s10 = scalar_lea.vmem %s125_s8, 32 }
   0xa   :  { %vm21_vm0 = vcmp.gt.s32.totalorder %v20_v5, 0  ;;  %p152_p0 = scmp.ne.s32.totalorder %s125_s8, %s151_s9  ;;  %p156_p1 = scmp.lt.s32.totalorder %s125_s8, %s125_s8 }
   0xb   :  { %v22_v7 = vsel %vm21_vm0, %v20_v5, 0  ;;  %p157_p2 = scmp.lt.s32.totalorder %s155_s10, %s151_s9 }
   0xc   :  { %v24_v8 = vand.u32 31, %v22_v7  ;;  %v23_v10 = vshrl.u32 %v22_v7, 5 }
   0xd   :  { %p158_p3 = por %p157_p2, %p156_p1 }
   0xe   :  { %v25_v11 = vsub.s32 32, %v24_v8  ;;  %v27_v13 = vshll.u32 %v173_v12, %v24_v8  ;;  %v30_v15 = vshll.u32 %v174_v14, %v24_v8  ;;  %v33_v17 = vshll.u32 %v175_v16, %v24_v8 }
   0xf   :  { %v36_v19 = vshll.u32 %v176_v18, %v24_v8  ;;  %v39_v21 = vshll.u32 %v177_v20, %v24_v8  ;;  %vm42_vm1 = vcmp.lt.s32.totalorder %v23_v10, 1  ;;  %vm45_vm2 = vcmp.lt.s32.totalorder %v23_v10, 4  ;;  %p159_p4 = pnand %p158_p3, %p152_p0 }
  0x10   :  { %v26_v22 = vshrl.u32 %v173_v12, %v25_v11  ;;  %v28_v23 = vshrl.u32 %v174_v14, %v25_v11  ;;  %v31_v24 = vshrl.u32 %v175_v16, %v25_v11  ;;  %v34_v25 = vshrl.u32 %v176_v18, %v25_v11 }
  0x11   :  { %v37_v26 = vshrl.u32 %v177_v20, %v25_v11  ;;  %v40_v28 = vshrl.u32 %v178_v27, %v25_v11  ;;  %vm43_vm3 = vcmp.lt.s32.totalorder %v23_v10, 2  ;;  %vm44_vm4 = vcmp.lt.s32.totalorder %v23_v10, 3 }
  0x12   :  { %v29_v30 = vor.u32 %v28_v23, %v27_v13  ;;  %v32_v31 = vor.u32 %v31_v24, %v30_v15  ;;  %v35_v32 = vor.u32 %v34_v25, %v33_v17 }
  0x13   :  { %v38_v33 = vor.u32 %v37_v26, %v36_v19  ;;  %v41_v34 = vor.u32 %v40_v28, %v39_v21 }
  0x14   :  { %v46_v35 = vsel %vm42_vm1, %v26_v22, %v29_v30  ;;  %v47_v36 = vsel %vm45_vm2, %v35_v32, 2102212464  ;;  %v50_v37 = vsel %vm42_vm1, %v29_v30, %v32_v31  ;;  %v54_v38 = vsel %vm42_vm1, %v32_v31, %v35_v32 }
  0x15   :  { %v48_v39 = vsel %vm44_vm4, %v32_v31, %v47_v36  ;;  %v51_v40 = vsel %vm45_vm2, %v38_v33, 920167782  ;;  %v55_v41 = vsel %vm45_vm2, %v41_v34, 1326507024 }
  0x16   :  { %v52_v42 = vsel %vm44_vm4, %v35_v32, %v51_v40  ;;  %v56_v43 = vsel %vm44_vm4, %v38_v33, %v55_v41  ;;  %v49_v44 = vsel %vm43_vm3, %v46_v35, %v48_v39 }
  0x17   :  { %v53_v45 = vsel %vm43_vm3, %v50_v37, %v52_v42  ;;  %v57_v46 = vsel %vm43_vm3, %v54_v38, %v56_v43  ;;  %v65_v51 = vmul.u32 %v58_v29, %v49_v44 }
  0x18   :  { %v199_v47 = vmul.u32.u64.low %v58_v29, %v57_v46  ;;  %v200_v48 = vmul.u32.u64.high %v58_v29, %v57_v46, %v199_v47  ;;  %v202_v49 = vmul.u32.u64.low %v58_v29, %v53_v45  ;;  %v203_v50 = vmul.u32.u64.high %v58_v29, %v53_v45, %v202_v49 }
  0x1a   :  { %vm67_vm5 = vc.u32 %v200_v48, %v202_v49  ;;  %v68_v52 = vadd.s32 1, %v203_v50  ;;  %v66_v63 = vadd.s32 %v202_v49, %v200_v48 }
  0x1c   :  { %v69_v53 = vsel %vm67_vm5, %v68_v52, %v203_v50 }
  0x1d   :  { %v70_v54 = vadd.s32 %v69_v53, %v65_v51 }
  0x1f   :  { %v71_v55 = vadd.s32 536870912, %v70_v54 }
  0x21   :  { %v72_v56 = vshrl.u32 %v71_v55, 30 }
  0x23   :  { %v73_v57 = vshll.u32 %v72_v56, 30  ;;  %v96_v14 = vsub.s32 4, %v72_v56 }
  0x25   :  { %v74_v58 = vsub.s32 %v70_v54, %v73_v57  ;;  %v97_v17 = vsel %vm12_vm7, %v96_v14, %v72_v56 }
  0x26   :  { %v99_v19 = vsel %vm11_vm8, 0, %v97_v17 }
  0x27   :  { %v76_v59 = vsub.s32 0, %v74_v58  ;;  %v103_v20 = vadd.s32 3, %v99_v19 }
  0x29   :  { %v133_v60 = vmin.u32 %v76_v59, %v74_v58  ;;  %v104_v21 = vand.u32 3, %v103_v20 }
  0x2b   :  { %v78_v61 = vclz %v133_v60  ;;  %vm109_vm9 = vcmp.eq.s32.totalorder %v104_v21, 2  ;;  %vm106_vm10 = vcmp.eq.s32.totalorder %v104_v21, 0  ;;  %vm105_vm11 = vcmp.lt.s32.totalorder %v104_v21, 2 }
  0x2d   :  { %v134_v62 = vadd.s32 4294967294, %v78_v61 }
  0x2f   :  { %vm135_vm6 = vcmp.lt.s32.totalorder %v134_v62, 0 }
  0x30   :  { %v81_v1 = vsel %vm135_vm6, 0, %v134_v62 }
  0x31   :  { %v82_v2 = vsub.s32 32, %v81_v1  ;;  %v83_v4 = vshll.u32 %v74_v58, %v81_v1  ;;  %v86_v5 = vsub.s32 4294967266, %v81_v1 }
  0x33   :  { %v84_v6 = vshrl.u32 %v66_v63, %v82_v2  ;;  %v87_v7 = vadd.s32 127, %v86_v5 }
  0x35   :  { %v85_v8 = vor.u32 %v84_v6, %v83_v4  ;;  %v88_v9 = vshll.u32 %v87_v7, 23 }
  0x37   :  { %v89_v10 = vor.u32 4788187, %v88_v9  ;;  %v92_v11 = vcvt.s32.f32 %v85_v8 }
  0x39   :  { %v90_v12 = vand.u32 2147483647, %v89_v10 }
  0x3b   :  { %v93_v13 = vmul.f32 %v92_v11, %v90_v12 }
  0x3d   :  { %v94_v15 = vxor.u32 2147483648, %v93_v13 }
  0x3f   :  { %v95_v16 = vsel %vm12_vm7, %v94_v15, %v93_v13 }
  0x40   :  { %v98_v18 = vsel %vm11_vm8, %v193_v0, %v95_v16 }
  0x41   :  { %147 = vcosq.f32 %v98_v18 }
  0x42   :  { %149 = vsinq.f32 %v98_v18 }
  0x4e   :  { %v148_v22 = vpop.eup %147 }
  0x4f   :  { %v150_v23 = vpop.eup %149  ;;  %v110_v24 = vxor.u32 2147483648, %v148_v22 }
  0x50   :  { %v107_v25 = vxor.u32 2147483648, %v150_v23 }
  0x51   :  { %v111_v3 = vsel %vm109_vm9, %v110_v24, %v150_v23 }
  0x52   :  { %v108_v26 = vsel %vm106_vm10, %v148_v22, %v107_v25 }
  0x53   :  { %v112_v27 = vsel %vm105_vm11, %v108_v26, %v111_v3 }
  0x54   :  { %v113_v28 = vsel %vm102_vm12, nan, %v112_v27 }
  0x55   :  { %v114_v29 = vadd.f32 1.0, %v113_v28 }
  0x57   :  { %v115_v30 = vmul.f32 0.5, %v114_v29 }
  0x59   :  { %117 = vst.msk [vmem:[#allocation2] sm:$0x1] %vm116_vm13, %v115_v30 }
  0x5a   :  { %162 = shalt.err (!%p159_p4)
}
  0x5b   :  { %127 = dma.vmem_to_hbm [thread:$0]  %s125_s8, 16, %s218_s1, [#allocation3]  }
  0x5c   :  { %171 = dma.done.wait [#allocation3], 16  }
  0x5d   :  { %172 = vsyncadd [#allocation3], 4294967280 }
  0x5e   :  { %131 = vsyncpa [#allocation3], 1 }

</bundles_post_ra>
